<compile_context>
chip_gen: v6e
topology: v6e:2x2x1
jax: 0.10.0
libtpu: 0.0.40
codegen_flags: <defaults>
</compile_context>

<pallas_src>
import jax
import jax.numpy as jnp
from jax.experimental import pallas as pl
from jax.experimental.pallas import tpu as pltpu


NEG_INF = -1e30  # large finite fill; equivalent to -inf under softmax, NaN-free for empty rows


def control_unit_kernel(x_ref, cw_ref, maskb_ref,
                        w_ref, bcq_ref, wca_ref, bca_ref,
                        c_out_ref, cv_out_ref):
    cw = cw_ref[...]                       # (TB, S, d) native dtype (f32 or bf16) -> MXU directly
    dt = cw.dtype

    # linear_cq(cat([c, q], -1)) as ONE fused K=2d MXU matmul, f32 accumulate.
    cq = jnp.dot(x_ref[...], w_ref[...],
                 preferred_element_type=jnp.float32) + bcq_ref[...]            # (TB, d)

    # linear_ca(cq[:, None, :] * cw) == ((cq * w_ca) . cw over d) + b_ca
    # Canonical single-query attention-score pattern: contraction on cw's LAST dim is
    # the MXU transposed-RHS push (no XLU transpose of the big tile); output is
    # lane-dense on S for the softmax.  Small operand is cast to cw's dtype so the
    # bf16 path never upcasts the (TB,S,d) tile.
    scaled = (cq * wca_ref[...]).astype(dt)[:, None, :]                        # (TB, 1, d)
    ca = jnp.einsum('bkd,bsd->bks', scaled, cw,
                    preferred_element_type=jnp.float32) + bca_ref[0, 0]        # (TB, 1, S)

    # mask_tensor(ca, mask, -inf) as an additive bias, then softmax over S (lane reduce).
    ca = ca + maskb_ref[...][:, None, :]
    m = jnp.max(ca, axis=-1, keepdims=True)
    e = jnp.exp(ca - m)
    denom = jnp.sum(e, axis=-1, keepdims=True)
    cv = e * pl.reciprocal(denom, approx=True)                                 # (TB, 1, S)

    # c = (cv * cw).sum(1): weighted sum over S on the MXU (cw consumed untransposed).
    c_new = jnp.einsum('bks,bsd->bkd', cv.astype(dt), cw,
                       preferred_element_type=jnp.float32)                     # (TB, 1, d)

    c_out_ref[...] = c_new[:, 0, :].astype(c_out_ref.dtype)                    # (TB, d)
    cv_out_ref[...] = cv[:, 0, :].astype(cv_out_ref.dtype)                     # (TB, S)


def _round_up(x, m):
    return ((x + m - 1) // m) * m


def _vmem_capacity_bytes():
    try:
        return int(pltpu.get_tpu_info().vmem_capacity_bytes)
    except Exception:
        return 64 * 1024 * 1024          # conservative default: v7x per-TC VMEM


def _vmem_limit_bytes():
    # ~3/4 of physical VMEM: ~48 MiB on v7x, ~96 MiB on v5e/v6e.
    return int(min(_vmem_capacity_bytes() * 3 // 4, 112 * 1024 * 1024))


def _auto_batch_tile(B, S, d, K, cw_itemsize):
    """Pick the batch tile from the VMEM budget (generation-aware), megacore-capped."""
    sub = 16 if cw_itemsize < 4 else 8          # sublane tile (bf16 packs 16 rows)
    d_l, S_l, K_l = _round_up(d, 128), _round_up(S, 128), _round_up(K, 128)
    # Per-batch-row VMEM footprint of one grid step's tiles ((8,128)-padded layouts).
    per_row = (_round_up(S, sub) * d_l * cw_itemsize          # cw tile (dominant)
               + 4 * (K_l + 2 * S_l + d_l))                   # x, mask bias, cv_out, c_out (f32)
    # Resident weights / bias vectors are still double-buffered by the pipeline.
    weights = 2 * 4 * (_round_up(K, 8) * d_l + 2 * 8 * d_l)
    budget = (7 * _vmem_capacity_bytes()) // 10 - weights
    tb = budget // (2 * per_row)                              # tiles are double-buffered
    tb = max(8, (tb // 8) * 8)
    # Megacore (v7x: 2 TCs share the grid): keep at least 2 grid steps when B allows.
    tb = min(tb, max(8, _round_up(pl.cdiv(B, 2), 8)))
    # TODO(synk): if 2 * 8 * per_row still exceeds the budget (huge S*d), add an
    # S-tiled online-softmax fallback (second grid axis + m/l/acc scratch) instead of
    # forcing tiny batch tiles.
    return tb


def control_unit_pallas(c, q, cw, mask, params, *, block_b=None):
    """c:(>=B,d)  q:(B,d)  cw:(B,S,d) f32 or bf16  mask:(B,S) -> (c_new:(B,d), cv:(B,S,1))."""
    w_cq, b_cq, w_ca, b_ca = params
    B, d = q.shape
    S = cw.shape[1]
    K = 2 * d
    f32 = jnp.float32
    c = c[:B]                                                  # c = c[:q.size(0)]

    # Only the *tiny* tensors are rebuilt wrapper-side; cw goes to the kernel untouched
    # (no padded HBM clone of the dominant stream).
    x = jnp.concatenate([c.astype(f32), q.astype(f32)], axis=1)          # (B, 2d)
    mask_bias = jnp.where(mask > 0, 0.0, NEG_INF).astype(f32)            # (B, S) additive bias
    w = w_cq.astype(f32)                                                 # (2d, d)
    bcq = jnp.reshape(b_cq, (1, d)).astype(f32)
    wca = jnp.reshape(w_ca, (1, d)).astype(f32)
    bca = jnp.reshape(b_ca, (1, 1)).astype(f32)

    cw_item = jnp.dtype(cw.dtype).itemsize
    TB = block_b if block_b is not None else _auto_batch_tile(B, S, d, K, cw_item)
    # Valid tilings: TB == B (trailing block dims equal full extents) or TB a multiple of 8.
    TB = B if TB >= B else max(8, (TB // 8) * 8)
    grid = (pl.cdiv(B, TB),)

    cost = pl.CostEstimate(
        flops=int(2 * B * K * d + 4 * B * S * d),
        transcendentals=int(B * S),
        bytes_accessed=int(B * S * d * cw_item
                           + 4 * (B * K + 2 * B * S + B * d + K * d + 3 * d)),
    )

    c_out, cv = pl.pallas_call(
        control_unit_kernel,
        out_shape=(
            jax.ShapeDtypeStruct((B, d), f32),
            jax.ShapeDtypeStruct((B, S), f32),
        ),
        grid=grid,
        in_specs=[
            pl.BlockSpec((TB, K), lambda i: (i, 0)),
            pl.BlockSpec((TB, S, d), lambda i: (i, 0, 0)),     # cw: batch-tiled, unpadded
            pl.BlockSpec((TB, S), lambda i: (i, 0)),           # additive mask bias
            pl.BlockSpec((K, d), lambda i: (0, 0)),            # weights stay resident
            pl.BlockSpec((1, d), lambda i: (0, 0)),
            pl.BlockSpec((1, d), lambda i: (0, 0)),
            pl.BlockSpec((1, 1), lambda i: (0, 0),
                         memory_space=pltpu.MemorySpace.SMEM), # scalar bias on scalar path
        ],
        out_specs=(
            pl.BlockSpec((TB, d), lambda i: (i, 0)),
            pl.BlockSpec((TB, S), lambda i: (i, 0)),
        ),
        compiler_params=pltpu.CompilerParams(
            dimension_semantics=("parallel",),
            vmem_limit_bytes=_vmem_limit_bytes(),
        ),
        cost_estimate=cost,
    )(x, cw, mask_bias, w, bcq, wca, bca)

    return c_out, cv[:, :, None]                              # cv shape (B, S, 1) like PyTorch


def make_params(key, d):
    # Shapes from nn.Linear(2d, d) and nn.Linear(d, 1); stored transposed for x @ W.
    k1, k2, k3 = jax.random.split(key, 3)
    w_cq = jax.random.normal(k1, (2 * d, d), jnp.float32) * 0.1
    b_cq = jax.random.normal(k2, (1, d), jnp.float32) * 0.1
    w_ca = jax.random.normal(k3, (1, d), jnp.float32) * 0.1
    b_ca = jnp.full((1, 1), 0.05, jnp.float32)
    return w_cq, b_cq, w_ca, b_ca


def control_unit_ref(c, q, cw, mask, params):
    # Pure-JAX reference mirroring the PyTorch forward.
    w_cq, b_cq, w_ca, b_ca = params
    c = c[: q.shape[0]]
    cw32 = cw.astype(jnp.float32)
    cq = jnp.concatenate([c, q], axis=1) @ w_cq + b_cq                    # (B, d)
    ca = jnp.einsum('bd,bsd->bs', cq * w_ca[0], cw32) + b_ca[0, 0]        # (B, S)
    ca = jnp.where(mask > 0, ca, -jnp.inf)
    cv = jax.nn.softmax(ca, axis=1)
    c_new = jnp.einsum('bs,bsd->bd', cv, cw32)
    return c_new, cv[:, :, None]


if __name__ == "__main__":
    B, S, d = 2, 8, 32
    key = jax.random.PRNGKey(0)
    kc, kq, kw, kp = jax.random.split(key, 4)

    c = jax.random.normal(kc, (B, d), jnp.float32)
    q = jax.random.normal(kq, (B, d), jnp.float32)
    cw = jax.random.normal(kw, (B, S, d), jnp.float32)
    lens = jnp.array([S, S - 3], jnp.int32)
    mask = (jnp.arange(S)[None, :] < lens[:, None]).astype(jnp.float32)

    params = make_params(kp, d)

    # f32 path
    c_out, cv = control_unit_pallas(c, q, cw, mask, params)
    jax.block_until_ready((c_out, cv))
    c_ref, cv_ref = control_unit_ref(c, q, cw, mask, params)
    assert jnp.allclose(c_out, c_ref, atol=2e-3, rtol=2e-3)
    assert jnp.allclose(cv, cv_ref, atol=2e-3, rtol=2e-3)

    # bf16 cw path: only when cw already lives in bf16 upstream (here simulated);
    # the kernel feeds it straight to the MXU with f32 accumulation (no VPU upcast).
    cw_bf16 = cw.astype(jnp.bfloat16)
    c_out_b, cv_b = control_unit_pallas(c, q, cw_bf16, mask, params)
    jax.block_until_ready((c_out_b, cv_b))
    c_ref_b, cv_ref_b = control_unit_ref(c, q, cw_bf16, mask, params)
    assert jnp.allclose(c_out_b, c_ref_b, atol=3e-2, rtol=3e-2)
    assert jnp.allclose(cv_b, cv_ref_b, atol=3e-2, rtol=3e-2)

    print("KERNEL_OK")
</pallas_src>

<mosaic_0001>
module attributes {stable_mosaic.version = 11 : i64} {
  func.func @control_unit_kernel(%arg0: i32, %arg1: memref<2x64xf32, #tpu.memory_space<vmem>>, %arg2: memref<2x8x32xf32, #tpu.memory_space<vmem>>, %arg3: memref<2x8xf32, #tpu.memory_space<vmem>>, %arg4: memref<64x32xf32, #tpu.memory_space<vmem>>, %arg5: memref<1x32xf32, #tpu.memory_space<vmem>>, %arg6: memref<1x32xf32, #tpu.memory_space<vmem>>, %arg7: memref<1x1xf32, #tpu.memory_space<smem>>, %arg8: memref<2x32xf32, #tpu.memory_space<vmem>>, %arg9: memref<2x8xf32, #tpu.memory_space<vmem>>) attributes {dimension_semantics = [#tpu.dimension_semantics<parallel>], iteration_bounds = array<i64: 1>, scalar_prefetch = 0 : i64, scratch_operands = 0 : i64, tpu.core_type = #tpu.core_type<tc>, window_params = [{transform_indices = @transform_0, window_bounds = array<i64: 2, 64>}, {transform_indices = @transform_1, window_bounds = array<i64: 2, 8, 32>}, {transform_indices = @transform_2, window_bounds = array<i64: 2, 8>}, {pipeline_mode = #tpu.pipeline_mode<synchronous>, transform_indices = @transform_3, window_bounds = array<i64: 64, 32>}, {pipeline_mode = #tpu.pipeline_mode<synchronous>, transform_indices = @transform_4, window_bounds = array<i64: 1, 32>}, {pipeline_mode = #tpu.pipeline_mode<synchronous>, transform_indices = @transform_5, window_bounds = array<i64: 1, 32>}, {transform_indices = @transform_6, window_bounds = array<i64: 1, 1>}, {transform_indices = @transform_7, window_bounds = array<i64: 2, 32>}, {transform_indices = @transform_8, window_bounds = array<i64: 2, 8>}]} {
    %c0 = arith.constant 0 : index
    %c0_0 = arith.constant 0 : index
    %c0_1 = arith.constant 0 : index
    %0 = vector.load %arg2[%c0, %c0_0, %c0_1] : memref<2x8x32xf32, #tpu.memory_space<vmem>>, vector<2x8x32xf32>
    %c0_2 = arith.constant 0 : index
    %c0_3 = arith.constant 0 : index
    %1 = vector.load %arg1[%c0_2, %c0_3] : memref<2x64xf32, #tpu.memory_space<vmem>>, vector<2x64xf32>
    %c0_4 = arith.constant 0 : index
    %c0_5 = arith.constant 0 : index
    %2 = vector.load %arg4[%c0_4, %c0_5] : memref<64x32xf32, #tpu.memory_space<vmem>>, vector<64x32xf32>
    %cst = arith.constant dense<0.000000e+00> : vector<2x32xf32>
    %3 = tpu.matmul %1, %2, %cst {dimension_numbers = #tpu.dot_dimension_numbers<[1], [0], [0], [1], [0, 0, 1, 1], [], []>} : vector<2x64xf32>, vector<64x32xf32>, vector<2x32xf32> -> vector<2x32xf32>
    %c0_6 = arith.constant 0 : index
    %c0_7 = arith.constant 0 : index
    %4 = vector.load %arg5[%c0_6, %c0_7] : memref<1x32xf32, #tpu.memory_space<vmem>>, vector<1x32xf32>
    %5 = vector.broadcast %4 : vector<1x32xf32> to vector<2x32xf32>
    %6 = arith.addf %3, %5 : vector<2x32xf32>
    %c0_8 = arith.constant 0 : index
    %c0_9 = arith.constant 0 : index
    %7 = vector.load %arg6[%c0_8, %c0_9] : memref<1x32xf32, #tpu.memory_space<vmem>>, vector<1x32xf32>
    %8 = vector.broadcast %7 : vector<1x32xf32> to vector<2x32xf32>
    %9 = arith.mulf %6, %8 : vector<2x32xf32>
    %10 = vector.shape_cast %9 : vector<2x32xf32> to vector<2x1x32xf32>
    "tpu.trace_start"() <{level = 10 : i32, message = "bkd,bsd->bks"}> : () -> ()
    %cst_10 = arith.constant dense<0.000000e+00> : vector<2x1x8xf32>
    %11 = tpu.matmul %10, %0, %cst_10 {dimension_numbers = #tpu.dot_dimension_numbers<[2], [2], [1], [1], [0, 0, 0, 1, 1, 1], [0], [0]>} : vector<2x1x32xf32>, vector<2x8x32xf32>, vector<2x1x8xf32> -> vector<2x1x8xf32>
    "tpu.trace_stop"() : () -> ()
    %c0_11 = arith.constant 0 : index
    %c0_12 = arith.constant 0 : index
    %12 = memref.load %arg7[%c0_11, %c0_12] : memref<1x1xf32, #tpu.memory_space<smem>>
    %13 = vector.broadcast %12 : f32 to vector<2x1x8xf32>
    %14 = arith.addf %11, %13 : vector<2x1x8xf32>
    %c0_13 = arith.constant 0 : index
    %c0_14 = arith.constant 0 : index
    %15 = vector.load %arg3[%c0_13, %c0_14] : memref<2x8xf32, #tpu.memory_space<vmem>>, vector<2x8xf32>
    %16 = vector.shape_cast %15 : vector<2x8xf32> to vector<2x1x8xf32>
    %17 = arith.addf %14, %16 : vector<2x1x8xf32>
    %cst_15 = arith.constant dense<0xFF800000> : vector<2x1xf32>
    %18 = vector.multi_reduction <maximumf>, %17, %cst_15 [2] : vector<2x1x8xf32> to vector<2x1xf32>
    %19 = vector.shape_cast %18 : vector<2x1xf32> to vector<2x1x1xf32>
    %20 = vector.broadcast %19 : vector<2x1x1xf32> to vector<2x1x8xf32>
    %21 = arith.subf %17, %20 : vector<2x1x8xf32>
    %22 = math.exp %21 : vector<2x1x8xf32>
    %cst_16 = arith.constant dense<0.000000e+00> : vector<2x1xf32>
    %23 = vector.multi_reduction <add>, %22, %cst_16 [2] : vector<2x1x8xf32> to vector<2x1xf32>
    %24 = vector.shape_cast %23 : vector<2x1xf32> to vector<2x1x1xf32>
    %25 = tpu.reciprocal %24 {approx = true} : vector<2x1x1xf32> -> vector<2x1x1xf32>
    %26 = vector.broadcast %25 : vector<2x1x1xf32> to vector<2x1x8xf32>
    %27 = arith.mulf %22, %26 : vector<2x1x8xf32>
    "tpu.trace_start"() <{level = 10 : i32, message = "bks,bsd->bkd"}> : () -> ()
    %cst_17 = arith.constant dense<0.000000e+00> : vector<2x1x32xf32>
    %28 = tpu.matmul %27, %0, %cst_17 {dimension_numbers = #tpu.dot_dimension_numbers<[2], [1], [1], [2], [0, 0, 0, 1, 1, 2], [0], [0]>} : vector<2x1x8xf32>, vector<2x8x32xf32>, vector<2x1x32xf32> -> vector<2x1x32xf32>
    "tpu.trace_stop"() : () -> ()
    %29 = vector.shape_cast %28 : vector<2x1x32xf32> to vector<2x32xf32>
    %c0_18 = arith.constant 0 : index
    %c0_19 = arith.constant 0 : index
    %30 = vector.load %arg8[%c0_18, %c0_19] : memref<2x32xf32, #tpu.memory_space<vmem>>, vector<2x32xf32>
    tpu.vector_store %arg8[%c0_18, %c0_19], %29 {strides = array<i32>} : memref<2x32xf32, #tpu.memory_space<vmem>>, vector<2x32xf32>,
    %31 = vector.shape_cast %27 : vector<2x1x8xf32> to vector<2x8xf32>
    %c0_20 = arith.constant 0 : index
    %c0_21 = arith.constant 0 : index
    %32 = vector.load %arg9[%c0_20, %c0_21] : memref<2x8xf32, #tpu.memory_space<vmem>>, vector<2x8xf32>
    tpu.vector_store %arg9[%c0_20, %c0_21], %31 {strides = array<i32>} : memref<2x8xf32, #tpu.memory_space<vmem>>, vector<2x8xf32>,
    return
  }
  func.func @transform_0(%arg0: i32) -> (i32, i32) {
    %c0_i32 = arith.constant 0 : i32
    %c0_i32_0 = arith.constant 0 : i32
    return %arg0, %c0_i32 : i32, i32
  }
  func.func @transform_1(%arg0: i32) -> (i32, i32, i32) {
    %c0_i32 = arith.constant 0 : i32
    %c0_i32_0 = arith.constant 0 : i32
    %c0_i32_1 = arith.constant 0 : i32
    return %arg0, %c0_i32, %c0_i32_0 : i32, i32, i32
  }
  func.func @transform_2(%arg0: i32) -> (i32, i32) {
    %c0_i32 = arith.constant 0 : i32
    %c0_i32_0 = arith.constant 0 : i32
    return %arg0, %c0_i32 : i32, i32
  }
  func.func @transform_3(%arg0: i32) -> (i32, i32) {
    %c0_i32 = arith.constant 0 : i32
    %c0_i32_0 = arith.constant 0 : i32
    %c0_i32_1 = arith.constant 0 : i32
    return %c0_i32, %c0_i32_0 : i32, i32
  }
  func.func @transform_4(%arg0: i32) -> (i32, i32) {
    %c0_i32 = arith.constant 0 : i32
    %c0_i32_0 = arith.constant 0 : i32
    %c0_i32_1 = arith.constant 0 : i32
    return %c0_i32, %c0_i32_0 : i32, i32
  }
  func.func @transform_5(%arg0: i32) -> (i32, i32) {
    %c0_i32 = arith.constant 0 : i32
    %c0_i32_0 = arith.constant 0 : i32
    %c0_i32_1 = arith.constant 0 : i32
    return %c0_i32, %c0_i32_0 : i32, i32
  }
  func.func @transform_6(%arg0: i32) -> (i32, i32) {
    %c0_i32 = arith.constant 0 : i32
    %c0_i32_0 = arith.constant 0 : i32
    %c0_i32_1 = arith.constant 0 : i32
    return %c0_i32, %c0_i32_0 : i32, i32
  }
  func.func @transform_7(%arg0: i32) -> (i32, i32) {
    %c0_i32 = arith.constant 0 : i32
    %c0_i32_0 = arith.constant 0 : i32
    return %arg0, %c0_i32 : i32, i32
  }
  func.func @transform_8(%arg0: i32) -> (i32, i32) {
    %c0_i32 = arith.constant 0 : i32
    %c0_i32_0 = arith.constant 0 : i32
    return %arg0, %c0_i32 : i32, i32
  }
}

</mosaic_0001>

<bundles_post_ra>
// kernel: tpu_custom_call.1
= control target key start
LH: loop header
LB: loop body
LE: loop exit
PB: predicated region body
PF: predicated region fallthrough
CT: control target
= control target key end

     0   :  { %15 = vsyncpa [#allocation4], 0  ;;  %v669_v1 = vmov 0.0   ;;  %vm670_vm0 = vmmov 0   ;;  %s802_s0 = inlined_call_operand.vmem [shape: f32[2,64], index: 0, kind: input, shape index: {}]   ;;  %s803_s1 = inlined_call_operand.vmem [shape: f32[2,8,32], index: 1, kind: input, shape index: {}]   ;;  %s804_s2 = inlined_call_operand.vmem [shape: f32[2,8], index: 2, kind: input, shape index: {}]   ;;  %s805_s3 = inlined_call_operand.vmem [shape: f32[64,32], index: 3, kind: input, shape index: {}]   ;;  %s806_s4 = inlined_call_operand.vmem [shape: f32[1,32], index: 4, kind: input, shape index: {}]   ;;  %s807_s5 = inlined_call_operand.vmem [shape: f32[1,32], index: 5, kind: input, shape index: {}]   ;;  %s808_s6 = inlined_call_operand.<no memory space> [shape: f32[1,1], index: 6, kind: input, shape index: {}]   ;;  %s809_s7 = inlined_call_operand.hbm [shape: f32[2,32], index: 7, kind: output, shape index: {0}]   ;;  %s810_s8 = inlined_call_operand.hbm [shape: f32[2,8], index: 8, kind: output, shape index: {1}]  }
   0x1   :  { %v41_v0 = vld [vmem:[%s805_s3 + $0x38] sm:$0xff]  ;;  %573 = vmatprep.subr.mxu0 %v669_v1  ;;  %v40_v2 = vld [vmem:[%s805_s3 + $0x30] sm:$0xff]  ;;  %589 = vmatprep.mubr.msk.f32.mxu0 %vm670_vm0, %v669_v1  ;;  %v39_v3 = vld [vmem:[%s805_s3 + $0x28] sm:$0xff] }
   0x2   :  { %574 = vmatpush3.msra.mxu0 %v41_v0  ;;  %592 = vmatprep.subr.mxu1 %v669_v1 }
   0x3   :  { %575 = vmatprep.subr.mxu0 %v669_v1  ;;  %594 = vmatprep.mubr.msk.f32.mxu1 %vm670_vm0, %v669_v1 }
   0x4   :  { %16 = vsyncpa [#allocation6], 0  ;;  %576 = vmatpush3.msra.mxu0 %v40_v2  ;;  %v38_v4 = vld [vmem:[%s805_s3 + $0x20] sm:$0xff]  ;;  %v37_v5 = vld [vmem:[%s805_s3 + $0x18] sm:$0xff]  ;;  %vm49_vm1 = vcmask 523264   ;;  %vm156_vm2 = vcmask 261120   ;;  %v135_v13 = vlaneseq  ;;  %v155_v29 = vstv %s808_s6 }
   0x5   :  { %577 = vmatprep.subr.mxu0 %v669_v1  ;;  %v36_v6 = vld [vmem:[%s805_s3 + $0x10] sm:$0xff]  ;;  %v35_v7 = vld [vmem:[%s805_s3 + $0x8] sm:$0xff]  ;;  %v34_v8 = vld [vmem:[%s805_s3] sm:$0xff]  ;;  %v671_v11 = vmov 1966171168   ;;  %vm335_vm3 = vcmask 57344  }
   0x6   :  { %578 = vmatpush3.msra.mxu0 %v39_v3  ;;  %v33_v9 = vld [vmem:[%s802_s0] sm:$0x3]  ;;  %v133_v12 = vunpack.c.l.s4 %v671_v11  ;;  %v136_v15 = vshrl.u32 %v135_v13, 7  ;;  %v32_v26 = vld [vmem:[%s803_s1 + $0x8] sm:$0xff]  ;;  %vm358_vm4 = vcmask 64512   ;;  %vm508_vm5 = vcmask 1041409  }
   0x7   :  { %579 = vmatprep.subr.mxu0 %v669_v1  ;;  %v31_v10 = vld [vmem:[%s803_s1] sm:$0xff]  ;;  %vm516_vm6 = vcmask 58368  }
   0x8   :  { %580 = vmatpush3.msra.mxu0 %v38_v4  ;;  %593 = vmatpush3.xpose.msk.msra.mxu1 %vm156_vm2, %v31_v10  ;;  %v134_v14 = vunpack.c.0.s8 %v133_v12  ;;  %v546_v16 = vld [vmem:[%s806_s4] ss:$0 sm:$0xff] }
   0x9   :  { %581 = vmatprep.subr.mxu0 %v669_v1  ;;  %597 = vmatprep.subr.mxu1 %v669_v1  ;;  %v548_v18 = vld [vmem:[%s807_s5] ss:$0 sm:$0xff] }
   0xa   :  { %582 = vmatpush3.msra.mxu0 %v37_v5  ;;  %v137_v20 = vsub.s32 %v134_v14, %v136_v15  ;;  %v553_v28 = vld.sshfl [vmem:[%s804_s2] sm:$0x11 pattern:$0x75316420]  ;;  %s672_s2 = smov [#allocation5]  }
   0xb   :  { %583 = vmatprep.subr.mxu0 %v669_v1  ;;  %v316_v30 = vcombine.high %v553_v28, %v553_v28  ;;  %s534_s6 = sshll.u32 %s672_s2, 4  ;;  %s535_s6 = int_to_ptr.vmem [resolvable:$true] %s534_s6 }
   0xc   :  { %584 = vmatpush3.msra.mxu0 %v36_v6  ;;  %v323_v31 = vrot.slane %v553_v28, %v137_v20  ;;  %s625_s30 = scalar_lea.vmem %s535_s6, 32  ;;  %p630_p1 = scmp.lt.s32.totalorder %s535_s6, %s535_s6 }
   0xd   :  { %585 = vmatprep.subr.mxu0 %v669_v1  ;;  %v330_v36 = vrot.slane %v316_v30, %v137_v20  ;;  %p626_p0 = scmp.ne.s32.totalorder %s535_s6, %s625_s30  ;;  %p631_p2 = scmp.lt.s32.totalorder %s625_s30, %s625_s30 }
   0xe   :  { %586 = vmatpush3.msra.mxu0 %v35_v7 }
   0xf   :  { %587 = vmatprep.subr.mxu0 %v669_v1  ;;  %p632_p3 = por %p631_p2, %p630_p1 }
  0x10   :  { %588 = vmatpush3.msra.mxu0 %v34_v8 }
  0x11   :  { %590 = vmatmul.mubr.msk.f32.vlgmr.msra.gmra.mxu0 %vm49_vm1, %v33_v9  ;;  %p633_p4 = pnand %p632_p3, %p626_p0 }
  0xd1   :  { %v119_v17 = vpop.f32.mrf.mxu0 }
  0xd2   :  { %v120_v19 = vadd.f32 %v546_v16, %v119_v17 }
  0xd3   :  { %v591_v21 = vpop.f32.mrf.mxu0 }
  0xd4   :  { %v130_v22 = vmul.f32 %v548_v18, %v120_v19 }
  0xd6   :  { %v138_v23 = vrot.slane %v130_v22, %v137_v20 }
  0xd8   :  { %v139_v24 = vcombine.high %v138_v23, %v138_v23  ;;  %v146_v25 = vrot.slane %v138_v23, %v137_v20 }
  0xda   :  { %595 = vmatmul.mubr.msk.f32.vlgmr.msra.gmra.mxu1 %vm156_vm2, %v146_v25  ;;  %v153_v27 = vrot.slane %v139_v24, %v137_v20 }
  0xdb   :  { %598 = vmatpush3.xpose.msk.msra.mxu1 %vm156_vm2, %v32_v26  ;;  %599 = vmatprep.mubr.msk.f32.mxu1 %vm670_vm0, %v669_v1 }
  0xdc   :  { %602 = vmatprep.subr.mxu1 %v669_v1 }
  0xde   :  { %600 = vmatmul.mubr.msk.f32.vlgmr.msra.gmra.mxu1 %vm156_vm2, %v153_v27 }
  0xdf   :  { %603 = vmatpush3.msra.mxu1 %v31_v10  ;;  %604 = vmatprep.mubr.msk.f32.mxu1 %vm670_vm0, %v669_v1 }
  0xe0   :  { %607 = vmatprep.subr.mxu1 %v669_v1 }
 0x19a   :  { %v228_v32 = vpop.f32.mrf.mxu1 }
 0x19b   :  { %v229_v33 = vadd.f32 %v228_v32, %v155_v29 }
 0x19c   :  { %v596_v34 = vpop.f32.mrf.mxu1 }
 0x19d   :  { %v333_v35 = vadd.f32 %v323_v31, %v229_v33 }
 0x19e   :  { %v303_v37 = vpop.f32.mrf.mxu1 }
 0x19f   :  { %v304_v38 = vadd.f32 %v303_v37, %v155_v29  ;;  %v336_v39 = vsel %vm335_vm3, %v333_v35, -inf }
 0x1a0   :  { %337 = vmax.xlane.f32.xlu0 %v336_v39  ;;  %v601_v40 = vpop.f32.mrf.mxu1 }
 0x1a1   :  { %v334_v41 = vadd.f32 %v330_v36, %v304_v38 }
 0x1a3   :  { %v339_v42 = vsel %vm335_vm3, %v334_v41, -inf }
 0x1a4   :  { %340 = vmax.xlane.f32.xlu0 %v339_v42 }
 0x229   :  { %v338_v43 = vpop.xlane.xlu0 %337 }
 0x22a   :  { %v342_v44 = vsub.f32 %v333_v35, %v338_v43 }
 0x22c   :  { %v344_v45 = vmul.f32 1.442695, %v342_v44 }
 0x22d   :  { %v341_v46 = vpop.xlane.xlu0 %340 }
 0x22e   :  { %617 = vpow2.f32 %v344_v45  ;;  %v343_v47 = vsub.f32 %v334_v41, %v341_v46 }
 0x230   :  { %v346_v48 = vmul.f32 1.442695, %v343_v47 }
 0x232   :  { %619 = vpow2.f32 %v346_v48 }
 0x23b   :  { %v618_v49 = vpop.eup %617 }
 0x23c   :  { %v348_v50 = vsel %vm335_vm3, %v618_v49, 0.0 }
 0x23d   :  { %349 = vadd.xlane.f32.xlu1 %v348_v50 }
 0x23f   :  { %v620_v51 = vpop.eup %619 }
 0x240   :  { %v351_v52 = vsel %vm335_vm3, %v620_v51, 0.0 }
 0x241   :  { %352 = vadd.xlane.f32.xlu1 %v351_v52 }
 0x2c6   :  { %v350_v53 = vpop.xlane.xlu1 %349 }
 0x2c7   :  { %621 = vrcp.f32 %v350_v53 }
 0x2ca   :  { %v353_v54 = vpop.xlane.xlu1 %352 }
 0x2cb   :  { %623 = vrcp.f32 %v353_v54 }
 0x2d4   :  { %v622_v55 = vpop.eup %621 }
 0x2d5   :  { %v356_v56 = vmul.f32 %v622_v55, %v618_v49 }
 0x2d7   :  { %605 = vmatmul.mubr.msk.f32.vlgmr.msra.gmra.mxu1 %vm358_vm4, %v356_v56 }
 0x2d8   :  { %v624_v57 = vpop.eup %623  ;;  %608 = vmatpush3.msra.mxu1 %v32_v26  ;;  %609 = vmatprep.mubr.msk.f32.mxu1 %vm670_vm0, %v669_v1 }
 0x2d9   :  { %v357_v58 = vmul.f32 %v624_v57, %v620_v51 }
 0x2db   :  { %610 = vmatmul.mubr.msk.f32.vlgmr.msra.gmra.mxu1 %vm358_vm4, %v357_v58  ;;  %v513_v59 = vrot.slane %v357_v58, 7 }
 0x2dd   :  { %v514_v60 = vsel %vm508_vm5, %v513_v59, %v356_v56 }
 0x2de   :  { %517 = vst.msk [vmem:[#allocation5] sm:$0x3] %vm516_vm6, %v514_v60 }
 0x2df   :  { %636 = shalt.err (!%p633_p4)
}
 0x2e0   :  { %537 = dma.vmem_to_hbm [thread:$0]  %s535_s6, 32, %s810_s8, [#allocation6]   ;;  %vm511_vm7 = vcmask 254976  }
 0x2e1   :  { %s673_s11 = smov [#allocation3]  }
 0x2e2   :  { %s524_s12 = sshll.u32 %s673_s11, 4  ;;  %s525_s12 = int_to_ptr.vmem [resolvable:$true] %s524_s12 }
 0x2e3   :  { %s645_s13 = scalar_lea.vmem %s525_s12, 32  ;;  %p650_p6 = scmp.lt.s32.totalorder %s525_s12, %s525_s12 }
 0x2e4   :  { %p646_p5 = scmp.ne.s32.totalorder %s525_s12, %s645_s13  ;;  %p651_p7 = scmp.lt.s32.totalorder %s645_s13, %s645_s13 }
 0x2e6   :  { %p652_p8 = por %p651_p7, %p650_p6 }
 0x2e8   :  { %p653_p9 = pnand %p652_p8, %p646_p5 }
 0x397   :  { %v428_v61 = vpop.f32.mrf.mxu1 }
 0x399   :  { %v606_v62 = vpop.f32.mrf.mxu1 }
 0x39b   :  { %v501_v63 = vpop.f32.mrf.mxu1 }
 0x39c   :  { %v507_v0 = vrot.slane %v501_v63, 7 }
 0x39d   :  { %v611_v1 = vpop.f32.mrf.mxu1 }
 0x39e   :  { %v509_v2 = vsel %vm508_vm5, %v507_v0, %v428_v61 }
 0x39f   :  { %512 = vst.msk [vmem:[#allocation3] sm:$0x3] %vm511_vm7, %v509_v2 }
 0x3a0   :  { %656 = shalt.err (!%p653_p9)
}
 0x3a1   :  { %527 = dma.vmem_to_hbm [thread:$0]  %s525_s12, 32, %s809_s7, [#allocation4]  }
 0x3a2   :  { %665 = dma.done.wait [#allocation4], 32  }
 0x3a3   :  { %666 = vsyncadd [#allocation4], 4294967264 }
 0x3a4   :  { %667 = dma.done.wait [#allocation6], 32  }
 0x3a5   :  { %668 = vsyncadd [#allocation6], 4294967264 }
 0x3a6   :  { %544 = vsyncpa [#allocation4], 1 }
 0x3a7   :  { %545 = vsyncpa [#allocation6], 1 }

</bundles_post_ra>
